<compile_context>
chip_gen: v7x
topology: tpu7x:2x2x1
jax: 0.10.0
libtpu: 0.0.40
codegen_flags: <defaults>
</compile_context>

<pallas_src>
import math
from functools import partial

import numpy as np
import jax
import jax.numpy as jnp
from jax.experimental import pallas as pl
from jax.experimental.pallas import tpu as pltpu


# ----------------------------------------------------------------------------
# Glue: bicubic interpolation matrix (PyTorch semantics, A = -0.75)
# ----------------------------------------------------------------------------
def _bicubic_matrix(in_size: int, out_size: int, a: float = -0.75) -> np.ndarray:
    def cub1(x):  # |x| <= 1
        return ((a + 2.0) * x - (a + 3.0)) * x * x + 1.0

    def cub2(x):  # 1 < |x| < 2
        return (((x * a) - 5.0 * a) * x + 8.0 * a) * x - 4.0 * a

    scale = in_size / out_size
    W = np.zeros((out_size, in_size), dtype=np.float32)
    for j in range(out_size):
        coord = (j + 0.5) * scale - 0.5
        i0 = math.floor(coord)
        t = coord - i0
        coeffs = (cub2(t + 1.0), cub1(t), cub1(1.0 - t), cub2(2.0 - t))
        for k in range(4):
            idx = min(max(i0 - 1 + k, 0), in_size - 1)  # border replication
            W[j, idx] += coeffs[k]
    return W


# ----------------------------------------------------------------------------
# Pallas kernel: B (image, channel) planes per grid step
# ----------------------------------------------------------------------------
def _transform_kernel(scale_ref, bias_ref, x_ref, wh_ref, wwt_ref, o_ref, *,
                      block_planes: int):
    g = pl.program_id(0)

    wh = wh_ref[...]     # (S, H)  bf16, loaded once per step
    wwt = wwt_ref[...]   # (W, S)  bf16

    for b in range(block_planes):                      # static unroll
        # uint8 -> f32 -> bf16 (exact for 0..255); cast fused into the kernel
        img = x_ref[b].astype(jnp.float32).astype(jnp.bfloat16)   # (H, W)

        # separable bicubic resize (+ implicit center crop via pre-sliced weights)
        tmp = jnp.dot(wh, img,
                      preferred_element_type=jnp.float32)          # (S, W) f32
        res = jnp.dot(tmp.astype(jnp.bfloat16), wwt,
                      preferred_element_type=jnp.float32)          # (S, S) f32

        # torchvision casts the resized result back to uint8: round + clamp
        res = jnp.clip(jnp.round(res), 0.0, 255.0)

        # ConvertImageDtype + Normalize fused into one FMA:
        #   scale = 1/(255*std_c), bias = -mean_c/std_c  (per-plane SMEM arrays)
        p = g * block_planes + b
        o_ref[b] = res * scale_ref[p] + bias_ref[p]


# ----------------------------------------------------------------------------
# Wrapper
# ----------------------------------------------------------------------------
def _pick_block_planes(num_planes, H, W, S,
                       vmem_budget_bytes=20 * 1024 * 1024, cap=16):
    # double-buffered uint8 input block + double-buffered f32 output block
    per_plane = 2 * (H * W) + 2 * (S * S * 4)
    b = max(1, min(cap, vmem_budget_bytes // per_plane, num_planes))
    return int(b)


def transform(x_u8, image_size, mean, std):
    """x_u8: uint8 array, NCHW. Returns float32 NCHW with H=W=image_size."""
    N, C, H, W = x_u8.shape
    S = image_size

    # Resize([S]): smaller edge -> S, other edge scaled (int truncation,
    # matching torchvision).
    if H <= W:
        rh, rw = S, int(S * W / H)
    else:
        rh, rw = int(S * H / W), S

    Wh = _bicubic_matrix(H, rh)          # (rh, H)
    Ww = _bicubic_matrix(W, rw)          # (rw, W)

    # CenterCrop(S): select output rows/cols of the resize matrices.
    top = int(round((rh - S) / 2.0))
    left = int(round((rw - S) / 2.0))
    wh_crop = jnp.asarray(Wh[top:top + S, :], dtype=jnp.bfloat16)       # (S, H)
    wwt_crop = jnp.asarray(Ww[left:left + S, :].T, dtype=jnp.bfloat16)  # (W, S)

    P = N * C
    B = _pick_block_planes(P, H, W, S)
    G = (P + B - 1) // B

    # Per-plane fused scale/bias (length padded to G*B so SMEM reads stay
    # in-bounds for the final partial block).
    mean_np = np.asarray(mean, dtype=np.float32)
    std_np = np.asarray(std, dtype=np.float32)
    scale_p = np.tile((1.0 / (255.0 * std_np)).astype(np.float32), N)
    bias_p = np.tile((-mean_np / std_np).astype(np.float32), N)
    pad = G * B - P
    if pad:
        scale_p = np.concatenate([scale_p, np.zeros(pad, np.float32)])
        bias_p = np.concatenate([bias_p, np.zeros(pad, np.float32)])
    scale_a = jnp.asarray(scale_p)
    bias_a = jnp.asarray(bias_p)

    x_flat = x_u8.reshape(P, H, W)       # stays uint8: cast happens in-kernel

    out_flat = pl.pallas_call(
        partial(_transform_kernel, block_planes=B),
        out_shape=jax.ShapeDtypeStruct((P, S, S), jnp.float32),
        grid_spec=pltpu.PrefetchScalarGridSpec(
            num_scalar_prefetch=0,
            grid=(G,),
            in_specs=[
                pl.BlockSpec(memory_space=pltpu.MemorySpace.SMEM),   # scale (per plane)
                pl.BlockSpec(memory_space=pltpu.MemorySpace.SMEM),   # bias  (per plane)
                pl.BlockSpec((B, H, W), lambda g: (g, 0, 0)),        # uint8 planes
                pl.BlockSpec((S, H), lambda g: (0, 0)),              # Wh  (crop, bf16)
                pl.BlockSpec((W, S), lambda g: (0, 0)),              # Ww^T (crop, bf16)
            ],
            out_specs=pl.BlockSpec((B, S, S), lambda g: (g, 0, 0)),
        ),
        compiler_params=pltpu.CompilerParams(
            dimension_semantics=(pltpu.PARALLEL,),
            vmem_limit_bytes=48 * 1024 * 1024,
        ),
    )(scale_a, bias_a, x_flat, wh_crop, wwt_crop)

    return out_flat.reshape(N, C, S, S)


if __name__ == "__main__":
    key = jax.random.PRNGKey(0)

    # Small, deterministic example: 2 RGB images, 20x24 uint8, resized/cropped
    # to 16x16 with CLIP-style mean/std.
    N, C, H, W = 2, 3, 20, 24
    image_size = 16
    mean = (0.48145466, 0.4578275, 0.40821073)
    std = (0.26862954, 0.26130258, 0.27577711)

    x = jax.random.randint(key, (N, C, H, W), 0, 256, dtype=jnp.int32).astype(jnp.uint8)

    out = transform(x, image_size, mean, std)
    jax.block_until_ready(out)

    assert out.shape == (N, C, image_size, image_size)
    assert out.dtype == jnp.float32
    print("KERNEL_OK")
</pallas_src>

<mosaic_0001>
module attributes {stable_mosaic.version = 11 : i64} {
  func.func @_transform_kernel(%arg0: i32, %arg1: memref<6xf32, #tpu.memory_space<smem>>, %arg2: memref<6xf32, #tpu.memory_space<smem>>, %arg3: memref<6x20x24xi8, #tpu.memory_space<vmem>>, %arg4: memref<16x20xbf16, #tpu.memory_space<vmem>>, %arg5: memref<24x16xbf16, #tpu.memory_space<vmem>>, %arg6: memref<6x16x16xf32, #tpu.memory_space<vmem>>) attributes {dimension_semantics = [#tpu.dimension_semantics<parallel>], iteration_bounds = array<i64: 1>, scalar_prefetch = 0 : i64, scratch_operands = 0 : i64, tpu.core_type = #tpu.core_type<tc>, window_params = [{transform_indices = @transform_0, window_bounds = array<i64: 6>}, {transform_indices = @transform_1, window_bounds = array<i64: 6>}, {transform_indices = @transform_2, window_bounds = array<i64: 6, 20, 24>}, {pipeline_mode = #tpu.pipeline_mode<synchronous>, transform_indices = @transform_3, window_bounds = array<i64: 16, 20>}, {pipeline_mode = #tpu.pipeline_mode<synchronous>, transform_indices = @transform_4, window_bounds = array<i64: 24, 16>}, {transform_indices = @transform_5, window_bounds = array<i64: 6, 16, 16>}]} {
    %c0 = arith.constant 0 : index
    %c0_0 = arith.constant 0 : index
    %0 = vector.load %arg4[%c0, %c0_0] : memref<16x20xbf16, #tpu.memory_space<vmem>>, vector<16x20xbf16>
    %c0_1 = arith.constant 0 : index
    %c0_2 = arith.constant 0 : index
    %1 = vector.load %arg5[%c0_1, %c0_2] : memref<24x16xbf16, #tpu.memory_space<vmem>>, vector<24x16xbf16>
    %c0_3 = arith.constant 0 : index
    %c0_4 = arith.constant 0 : index
    %c0_5 = arith.constant 0 : index
    %2 = vector.load %arg3[%c0_3, %c0_4, %c0_5] : memref<6x20x24xi8, #tpu.memory_space<vmem>>, vector<1x20x24xi8>
    %3 = vector.shape_cast %2 : vector<1x20x24xi8> to vector<20x24xi8>
    %4 = arith.uitofp %3 : vector<20x24xi8> to vector<20x24xf32>
    %5 = arith.truncf %4 : vector<20x24xf32> to vector<20x24xbf16>
    %cst = arith.constant dense<0.000000e+00> : vector<16x24xf32>
    %6 = tpu.matmul %0, %5, %cst {dimension_numbers = #tpu.dot_dimension_numbers<[1], [0], [0], [1], [0, 0, 1, 1], [], []>} : vector<16x20xbf16>, vector<20x24xbf16>, vector<16x24xf32> -> vector<16x24xf32>
    %7 = arith.truncf %6 : vector<16x24xf32> to vector<16x24xbf16>
    %cst_6 = arith.constant dense<0.000000e+00> : vector<16x16xf32>
    %8 = tpu.matmul %7, %1, %cst_6 {dimension_numbers = #tpu.dot_dimension_numbers<[1], [0], [0], [1], [0, 0, 1, 1], [], []>} : vector<16x24xbf16>, vector<24x16xbf16>, vector<16x16xf32> -> vector<16x16xf32>
    %9 = math.roundeven %8 : vector<16x16xf32>
    %cst_7 = arith.constant 0.000000e+00 : f32
    %cst_8 = arith.constant 2.550000e+02 : f32
    %10 = vector.broadcast %cst_7 : f32 to vector<16x16xf32>
    %11 = arith.maximumf %10, %9 : vector<16x16xf32>
    %12 = vector.broadcast %cst_8 : f32 to vector<16x16xf32>
    %13 = arith.minimumf %12, %11 : vector<16x16xf32>
    %c6_i32 = arith.constant 6 : i32
    %14 = arith.muli %arg0, %c6_i32 : i32
    %c0_i32 = arith.constant 0 : i32
    %15 = arith.addi %14, %c0_i32 : i32
    %16 = arith.index_cast %15 : i32 to index
    %17 = memref.load %arg1[%16] : memref<6xf32, #tpu.memory_space<smem>>
    %18 = vector.broadcast %17 : f32 to vector<16x16xf32>
    %19 = arith.mulf %13, %18 : vector<16x16xf32>
    %20 = arith.index_cast %15 : i32 to index
    %21 = memref.load %arg2[%20] : memref<6xf32, #tpu.memory_space<smem>>
    %22 = vector.broadcast %21 : f32 to vector<16x16xf32>
    %23 = arith.addf %19, %22 : vector<16x16xf32>
    %c0_9 = arith.constant 0 : index
    %c0_10 = arith.constant 0 : index
    %c0_11 = arith.constant 0 : index
    %24 = vector.load %arg6[%c0_9, %c0_10, %c0_11] : memref<6x16x16xf32, #tpu.memory_space<vmem>>, vector<1x16x16xf32>
    %25 = vector.shape_cast %24 : vector<1x16x16xf32> to vector<16x16xf32>
    %26 = vector.shape_cast %23 : vector<16x16xf32> to vector<1x16x16xf32>
    tpu.vector_store %arg6[%c0_9, %c0_10, %c0_11], %26 {strides = array<i32>} : memref<6x16x16xf32, #tpu.memory_space<vmem>>, vector<1x16x16xf32>,
    %c1 = arith.constant 1 : index
    %c0_12 = arith.constant 0 : index
    %c0_13 = arith.constant 0 : index
    %27 = vector.load %arg3[%c1, %c0_12, %c0_13] : memref<6x20x24xi8, #tpu.memory_space<vmem>>, vector<1x20x24xi8>
    %28 = vector.shape_cast %27 : vector<1x20x24xi8> to vector<20x24xi8>
    %29 = arith.uitofp %28 : vector<20x24xi8> to vector<20x24xf32>
    %30 = arith.truncf %29 : vector<20x24xf32> to vector<20x24xbf16>
    %cst_14 = arith.constant dense<0.000000e+00> : vector<16x24xf32>
    %31 = tpu.matmul %0, %30, %cst_14 {dimension_numbers = #tpu.dot_dimension_numbers<[1], [0], [0], [1], [0, 0, 1, 1], [], []>} : vector<16x20xbf16>, vector<20x24xbf16>, vector<16x24xf32> -> vector<16x24xf32>
    %32 = arith.truncf %31 : vector<16x24xf32> to vector<16x24xbf16>
    %cst_15 = arith.constant dense<0.000000e+00> : vector<16x16xf32>
    %33 = tpu.matmul %32, %1, %cst_15 {dimension_numbers = #tpu.dot_dimension_numbers<[1], [0], [0], [1], [0, 0, 1, 1], [], []>} : vector<16x24xbf16>, vector<24x16xbf16>, vector<16x16xf32> -> vector<16x16xf32>
    %34 = math.roundeven %33 : vector<16x16xf32>
    %cst_16 = arith.constant 0.000000e+00 : f32
    %cst_17 = arith.constant 2.550000e+02 : f32
    %35 = vector.broadcast %cst_16 : f32 to vector<16x16xf32>
    %36 = arith.maximumf %35, %34 : vector<16x16xf32>
    %37 = vector.broadcast %cst_17 : f32 to vector<16x16xf32>
    %38 = arith.minimumf %37, %36 : vector<16x16xf32>
    %c6_i32_18 = arith.constant 6 : i32
    %39 = arith.muli %arg0, %c6_i32_18 : i32
    %c1_i32 = arith.constant 1 : i32
    %40 = arith.addi %39, %c1_i32 : i32
    %41 = arith.index_cast %40 : i32 to index
    %42 = memref.load %arg1[%41] : memref<6xf32, #tpu.memory_space<smem>>
    %43 = vector.broadcast %42 : f32 to vector<16x16xf32>
    %44 = arith.mulf %38, %43 : vector<16x16xf32>
    %45 = arith.index_cast %40 : i32 to index
    %46 = memref.load %arg2[%45] : memref<6xf32, #tpu.memory_space<smem>>
    %47 = vector.broadcast %46 : f32 to vector<16x16xf32>
    %48 = arith.addf %44, %47 : vector<16x16xf32>
    %c1_19 = arith.constant 1 : index
    %c0_20 = arith.constant 0 : index
    %c0_21 = arith.constant 0 : index
    %49 = vector.load %arg6[%c1_19, %c0_20, %c0_21] : memref<6x16x16xf32, #tpu.memory_space<vmem>>, vector<1x16x16xf32>
    %50 = vector.shape_cast %49 : vector<1x16x16xf32> to vector<16x16xf32>
    %51 = vector.shape_cast %48 : vector<16x16xf32> to vector<1x16x16xf32>
    tpu.vector_store %arg6[%c1_19, %c0_20, %c0_21], %51 {strides = array<i32>} : memref<6x16x16xf32, #tpu.memory_space<vmem>>, vector<1x16x16xf32>,
    %c2 = arith.constant 2 : index
    %c0_22 = arith.constant 0 : index
    %c0_23 = arith.constant 0 : index
    %52 = vector.load %arg3[%c2, %c0_22, %c0_23] : memref<6x20x24xi8, #tpu.memory_space<vmem>>, vector<1x20x24xi8>
    %53 = vector.shape_cast %52 : vector<1x20x24xi8> to vector<20x24xi8>
    %54 = arith.uitofp %53 : vector<20x24xi8> to vector<20x24xf32>
    %55 = arith.truncf %54 : vector<20x24xf32> to vector<20x24xbf16>
    %cst_24 = arith.constant dense<0.000000e+00> : vector<16x24xf32>
    %56 = tpu.matmul %0, %55, %cst_24 {dimension_numbers = #tpu.dot_dimension_numbers<[1], [0], [0], [1], [0, 0, 1, 1], [], []>} : vector<16x20xbf16>, vector<20x24xbf16>, vector<16x24xf32> -> vector<16x24xf32>
    %57 = arith.truncf %56 : vector<16x24xf32> to vector<16x24xbf16>
    %cst_25 = arith.constant dense<0.000000e+00> : vector<16x16xf32>
    %58 = tpu.matmul %57, %1, %cst_25 {dimension_numbers = #tpu.dot_dimension_numbers<[1], [0], [0], [1], [0, 0, 1, 1], [], []>} : vector<16x24xbf16>, vector<24x16xbf16>, vector<16x16xf32> -> vector<16x16xf32>
    %59 = math.roundeven %58 : vector<16x16xf32>
    %cst_26 = arith.constant 0.000000e+00 : f32
    %cst_27 = arith.constant 2.550000e+02 : f32
    %60 = vector.broadcast %cst_26 : f32 to vector<16x16xf32>
    %61 = arith.maximumf %60, %59 : vector<16x16xf32>
    %62 = vector.broadcast %cst_27 : f32 to vector<16x16xf32>
    %63 = arith.minimumf %62, %61 : vector<16x16xf32>
    %c6_i32_28 = arith.constant 6 : i32
    %64 = arith.muli %arg0, %c6_i32_28 : i32
    %c2_i32 = arith.constant 2 : i32
    %65 = arith.addi %64, %c2_i32 : i32
    %66 = arith.index_cast %65 : i32 to index
    %67 = memref.load %arg1[%66] : memref<6xf32, #tpu.memory_space<smem>>
    %68 = vector.broadcast %67 : f32 to vector<16x16xf32>
    %69 = arith.mulf %63, %68 : vector<16x16xf32>
    %70 = arith.index_cast %65 : i32 to index
    %71 = memref.load %arg2[%70] : memref<6xf32, #tpu.memory_space<smem>>
    %72 = vector.broadcast %71 : f32 to vector<16x16xf32>
    %73 = arith.addf %69, %72 : vector<16x16xf32>
    %c2_29 = arith.constant 2 : index
    %c0_30 = arith.constant 0 : index
    %c0_31 = arith.constant 0 : index
    %74 = vector.load %arg6[%c2_29, %c0_30, %c0_31] : memref<6x16x16xf32, #tpu.memory_space<vmem>>, vector<1x16x16xf32>
    %75 = vector.shape_cast %74 : vector<1x16x16xf32> to vector<16x16xf32>
    %76 = vector.shape_cast %73 : vector<16x16xf32> to vector<1x16x16xf32>
    tpu.vector_store %arg6[%c2_29, %c0_30, %c0_31], %76 {strides = array<i32>} : memref<6x16x16xf32, #tpu.memory_space<vmem>>, vector<1x16x16xf32>,
    %c3 = arith.constant 3 : index
    %c0_32 = arith.constant 0 : index
    %c0_33 = arith.constant 0 : index
    %77 = vector.load %arg3[%c3, %c0_32, %c0_33] : memref<6x20x24xi8, #tpu.memory_space<vmem>>, vector<1x20x24xi8>
    %78 = vector.shape_cast %77 : vector<1x20x24xi8> to vector<20x24xi8>
    %79 = arith.uitofp %78 : vector<20x24xi8> to vector<20x24xf32>
    %80 = arith.truncf %79 : vector<20x24xf32> to vector<20x24xbf16>
    %cst_34 = arith.constant dense<0.000000e+00> : vector<16x24xf32>
    %81 = tpu.matmul %0, %80, %cst_34 {dimension_numbers = #tpu.dot_dimension_numbers<[1], [0], [0], [1], [0, 0, 1, 1], [], []>} : vector<16x20xbf16>, vector<20x24xbf16>, vector<16x24xf32> -> vector<16x24xf32>
    %82 = arith.truncf %81 : vector<16x24xf32> to vector<16x24xbf16>
    %cst_35 = arith.constant dense<0.000000e+00> : vector<16x16xf32>
    %83 = tpu.matmul %82, %1, %cst_35 {dimension_numbers = #tpu.dot_dimension_numbers<[1], [0], [0], [1], [0, 0, 1, 1], [], []>} : vector<16x24xbf16>, vector<24x16xbf16>, vector<16x16xf32> -> vector<16x16xf32>
    %84 = math.roundeven %83 : vector<16x16xf32>
    %cst_36 = arith.constant 0.000000e+00 : f32
    %cst_37 = arith.constant 2.550000e+02 : f32
    %85 = vector.broadcast %cst_36 : f32 to vector<16x16xf32>
    %86 = arith.maximumf %85, %84 : vector<16x16xf32>
    %87 = vector.broadcast %cst_37 : f32 to vector<16x16xf32>
    %88 = arith.minimumf %87, %86 : vector<16x16xf32>
    %c6_i32_38 = arith.constant 6 : i32
    %89 = arith.muli %arg0, %c6_i32_38 : i32
    %c3_i32 = arith.constant 3 : i32
    %90 = arith.addi %89, %c3_i32 : i32
    %91 = arith.index_cast %90 : i32 to index
    %92 = memref.load %arg1[%91] : memref<6xf32, #tpu.memory_space<smem>>
    %93 = vector.broadcast %92 : f32 to vector<16x16xf32>
    %94 = arith.mulf %88, %93 : vector<16x16xf32>
    %95 = arith.index_cast %90 : i32 to index
    %96 = memref.load %arg2[%95] : memref<6xf32, #tpu.memory_space<smem>>
    %97 = vector.broadcast %96 : f32 to vector<16x16xf32>
    %98 = arith.addf %94, %97 : vector<16x16xf32>
    %c3_39 = arith.constant 3 : index
    %c0_40 = arith.constant 0 : index
    %c0_41 = arith.constant 0 : index
    %99 = vector.load %arg6[%c3_39, %c0_40, %c0_41] : memref<6x16x16xf32, #tpu.memory_space<vmem>>, vector<1x16x16xf32>
    %100 = vector.shape_cast %99 : vector<1x16x16xf32> to vector<16x16xf32>
    %101 = vector.shape_cast %98 : vector<16x16xf32> to vector<1x16x16xf32>
    tpu.vector_store %arg6[%c3_39, %c0_40, %c0_41], %101 {strides = array<i32>} : memref<6x16x16xf32, #tpu.memory_space<vmem>>, vector<1x16x16xf32>,
    %c4 = arith.constant 4 : index
    %c0_42 = arith.constant 0 : index
    %c0_43 = arith.constant 0 : index
    %102 = vector.load %arg3[%c4, %c0_42, %c0_43] : memref<6x20x24xi8, #tpu.memory_space<vmem>>, vector<1x20x24xi8>
    %103 = vector.shape_cast %102 : vector<1x20x24xi8> to vector<20x24xi8>
    %104 = arith.uitofp %103 : vector<20x24xi8> to vector<20x24xf32>
    %105 = arith.truncf %104 : vector<20x24xf32> to vector<20x24xbf16>
    %cst_44 = arith.constant dense<0.000000e+00> : vector<16x24xf32>
    %106 = tpu.matmul %0, %105, %cst_44 {dimension_numbers = #tpu.dot_dimension_numbers<[1], [0], [0], [1], [0, 0, 1, 1], [], []>} : vector<16x20xbf16>, vector<20x24xbf16>, vector<16x24xf32> -> vector<16x24xf32>
    %107 = arith.truncf %106 : vector<16x24xf32> to vector<16x24xbf16>
    %cst_45 = arith.constant dense<0.000000e+00> : vector<16x16xf32>
    %108 = tpu.matmul %107, %1, %cst_45 {dimension_numbers = #tpu.dot_dimension_numbers<[1], [0], [0], [1], [0, 0, 1, 1], [], []>} : vector<16x24xbf16>, vector<24x16xbf16>, vector<16x16xf32> -> vector<16x16xf32>
    %109 = math.roundeven %108 : vector<16x16xf32>
    %cst_46 = arith.constant 0.000000e+00 : f32
    %cst_47 = arith.constant 2.550000e+02 : f32
    %110 = vector.broadcast %cst_46 : f32 to vector<16x16xf32>
    %111 = arith.maximumf %110, %109 : vector<16x16xf32>
    %112 = vector.broadcast %cst_47 : f32 to vector<16x16xf32>
    %113 = arith.minimumf %112, %111 : vector<16x16xf32>
    %c6_i32_48 = arith.constant 6 : i32
    %114 = arith.muli %arg0, %c6_i32_48 : i32
    %c4_i32 = arith.constant 4 : i32
    %115 = arith.addi %114, %c4_i32 : i32
    %116 = arith.index_cast %115 : i32 to index
    %117 = memref.load %arg1[%116] : memref<6xf32, #tpu.memory_space<smem>>
    %118 = vector.broadcast %117 : f32 to vector<16x16xf32>
    %119 = arith.mulf %113, %118 : vector<16x16xf32>
    %120 = arith.index_cast %115 : i32 to index
    %121 = memref.load %arg2[%120] : memref<6xf32, #tpu.memory_space<smem>>
    %122 = vector.broadcast %121 : f32 to vector<16x16xf32>
    %123 = arith.addf %119, %122 : vector<16x16xf32>
    %c4_49 = arith.constant 4 : index
    %c0_50 = arith.constant 0 : index
    %c0_51 = arith.constant 0 : index
    %124 = vector.load %arg6[%c4_49, %c0_50, %c0_51] : memref<6x16x16xf32, #tpu.memory_space<vmem>>, vector<1x16x16xf32>
    %125 = vector.shape_cast %124 : vector<1x16x16xf32> to vector<16x16xf32>
    %126 = vector.shape_cast %123 : vector<16x16xf32> to vector<1x16x16xf32>
    tpu.vector_store %arg6[%c4_49, %c0_50, %c0_51], %126 {strides = array<i32>} : memref<6x16x16xf32, #tpu.memory_space<vmem>>, vector<1x16x16xf32>,
    %c5 = arith.constant 5 : index
    %c0_52 = arith.constant 0 : index
    %c0_53 = arith.constant 0 : index
    %127 = vector.load %arg3[%c5, %c0_52, %c0_53] : memref<6x20x24xi8, #tpu.memory_space<vmem>>, vector<1x20x24xi8>
    %128 = vector.shape_cast %127 : vector<1x20x24xi8> to vector<20x24xi8>
    %129 = arith.uitofp %128 : vector<20x24xi8> to vector<20x24xf32>
    %130 = arith.truncf %129 : vector<20x24xf32> to vector<20x24xbf16>
    %cst_54 = arith.constant dense<0.000000e+00> : vector<16x24xf32>
    %131 = tpu.matmul %0, %130, %cst_54 {dimension_numbers = #tpu.dot_dimension_numbers<[1], [0], [0], [1], [0, 0, 1, 1], [], []>} : vector<16x20xbf16>, vector<20x24xbf16>, vector<16x24xf32> -> vector<16x24xf32>
    %132 = arith.truncf %131 : vector<16x24xf32> to vector<16x24xbf16>
    %cst_55 = arith.constant dense<0.000000e+00> : vector<16x16xf32>
    %133 = tpu.matmul %132, %1, %cst_55 {dimension_numbers = #tpu.dot_dimension_numbers<[1], [0], [0], [1], [0, 0, 1, 1], [], []>} : vector<16x24xbf16>, vector<24x16xbf16>, vector<16x16xf32> -> vector<16x16xf32>
    %134 = math.roundeven %133 : vector<16x16xf32>
    %cst_56 = arith.constant 0.000000e+00 : f32
    %cst_57 = arith.constant 2.550000e+02 : f32
    %135 = vector.broadcast %cst_56 : f32 to vector<16x16xf32>
    %136 = arith.maximumf %135, %134 : vector<16x16xf32>
    %137 = vector.broadcast %cst_57 : f32 to vector<16x16xf32>
    %138 = arith.minimumf %137, %136 : vector<16x16xf32>
    %c6_i32_58 = arith.constant 6 : i32
    %139 = arith.muli %arg0, %c6_i32_58 : i32
    %c5_i32 = arith.constant 5 : i32
    %140 = arith.addi %139, %c5_i32 : i32
    %141 = arith.index_cast %140 : i32 to index
    %142 = memref.load %arg1[%141] : memref<6xf32, #tpu.memory_space<smem>>
    %143 = vector.broadcast %142 : f32 to vector<16x16xf32>
    %144 = arith.mulf %138, %143 : vector<16x16xf32>
    %145 = arith.index_cast %140 : i32 to index
    %146 = memref.load %arg2[%145] : memref<6xf32, #tpu.memory_space<smem>>
    %147 = vector.broadcast %146 : f32 to vector<16x16xf32>
    %148 = arith.addf %144, %147 : vector<16x16xf32>
    %c5_59 = arith.constant 5 : index
    %c0_60 = arith.constant 0 : index
    %c0_61 = arith.constant 0 : index
    %149 = vector.load %arg6[%c5_59, %c0_60, %c0_61] : memref<6x16x16xf32, #tpu.memory_space<vmem>>, vector<1x16x16xf32>
    %150 = vector.shape_cast %149 : vector<1x16x16xf32> to vector<16x16xf32>
    %151 = vector.shape_cast %148 : vector<16x16xf32> to vector<1x16x16xf32>
    tpu.vector_store %arg6[%c5_59, %c0_60, %c0_61], %151 {strides = array<i32>} : memref<6x16x16xf32, #tpu.memory_space<vmem>>, vector<1x16x16xf32>,
    return
  }
  func.func @transform_0(%arg0: i32) -> i32 {
    %c0_i32 = arith.constant 0 : i32
    %c0_i32_0 = arith.constant 0 : i32
    return %c0_i32 : i32
  }
  func.func @transform_1(%arg0: i32) -> i32 {
    %c0_i32 = arith.constant 0 : i32
    %c0_i32_0 = arith.constant 0 : i32
    return %c0_i32 : i32
  }
  func.func @transform_2(%arg0: i32) -> (i32, i32, i32) {
    %c0_i32 = arith.constant 0 : i32
    %c0_i32_0 = arith.constant 0 : i32
    %c0_i32_1 = arith.constant 0 : i32
    return %arg0, %c0_i32, %c0_i32_0 : i32, i32, i32
  }
  func.func @transform_3(%arg0: i32) -> (i32, i32) {
    %c0_i32 = arith.constant 0 : i32
    %c0_i32_0 = arith.constant 0 : i32
    %c0_i32_1 = arith.constant 0 : i32
    return %c0_i32, %c0_i32_0 : i32, i32
  }
  func.func @transform_4(%arg0: i32) -> (i32, i32) {
    %c0_i32 = arith.constant 0 : i32
    %c0_i32_0 = arith.constant 0 : i32
    %c0_i32_1 = arith.constant 0 : i32
    return %c0_i32, %c0_i32_0 : i32, i32
  }
  func.func @transform_5(%arg0: i32) -> (i32, i32, i32) {
    %c0_i32 = arith.constant 0 : i32
    %c0_i32_0 = arith.constant 0 : i32
    %c0_i32_1 = arith.constant 0 : i32
    return %arg0, %c0_i32, %c0_i32_0 : i32, i32, i32
  }
}

</mosaic_0001>

<bundles_post_ra>
// kernel: tpu_custom_call.1
= control target key start
LH: loop header
LB: loop body
LE: loop exit
PB: predicated region body
PF: predicated region fallthrough
CT: control target
= control target key end

     0   :  { %10 = vsyncpa [#allocation5], 0  ;;  %s1292_s0 = inlined_call_operand.vmem [shape: f32[6], index: 0, kind: input, shape index: {}]   ;;  %s1293_s1 = inlined_call_operand.vmem [shape: f32[6], index: 1, kind: input, shape index: {}]   ;;  %s1294_s2 = inlined_call_operand.hbm [shape: u8[6,20,24], index: 2, kind: input, shape index: {}]   ;;  %s1295_s3 = inlined_call_operand.vmem [shape: bf16[16,20], index: 3, kind: input, shape index: {}]   ;;  %s1296_s4 = inlined_call_operand.vmem [shape: bf16[24,16], index: 4, kind: input, shape index: {}]   ;;  %s1297_s5 = inlined_call_operand.hbm [shape: f32[6,16,16], index: 5, kind: output, shape index: {}]  }
   0x1   :  { %11 = vsyncpa [#allocation7], 0 }
   0x2   :  { %12 = vsyncpa [#allocation3], 0 }
   0x3   :  { %13 = vsyncpa [#allocation4], 0  ;;  %s20_s20 = sshll.u32 %s1292_s0, 4  ;;  %s30_s23 = sshll.u32 %s1293_s1, 4  ;;  %s21_s20 = int_to_ptr.vmem [resolvable:$true] %s20_s20  ;;  %s31_s23 = int_to_ptr.vmem [resolvable:$true] %s30_s23 }
   0x4   :  { %s1040_s24 = scalar_lea.vmem %s21_s20, 16  ;;  %p1045_p1 = scmp.lt.s32.totalorder %s21_s20, %s21_s20 }
   0x5   :  { %p1041_p0 = scmp.ne.s32.totalorder %s21_s20, %s1040_s24  ;;  %p1046_p2 = scmp.lt.s32.totalorder %s1040_s24, %s1040_s24 }
   0x7   :  { %p1047_p3 = por %p1046_p2, %p1045_p1 }
   0x9   :  { %p1048_p4 = pnand %p1047_p3, %p1041_p0 }
   0xb   :  { %1051 = shalt.err (!%p1048_p4)
}
   0xc   :  { %s1116_s25 = smov [#allocation2]   ;;  %s1052_s26 = scalar_lea.vmem %s31_s23, 16 }
   0xd   :  { %23 = dma.vmem_to_smem %s21_s20, 16, %s1116_s25, [#allocation5]  }
   0xe   :  { %p1053_p5 = scmp.ne.s32.totalorder %s31_s23, %s1052_s26  ;;  %p1057_p6 = scmp.lt.s32.totalorder %s31_s23, %s31_s23 }
   0xf   :  { %p1058_p7 = scmp.lt.s32.totalorder %s1052_s26, %s1052_s26 }
  0x11   :  { %p1059_p8 = por %p1058_p7, %p1057_p6 }
  0x13   :  { %p1060_p9 = pnand %p1059_p8, %p1053_p5 }
  0x15   :  { %1063 = shalt.err (!%p1060_p9)
}
  0x16   :  { %s1117_s0 = smov [#allocation6]   ;;  %s1118_s1 = smov [#allocation8]  }
  0x17   :  { %33 = dma.vmem_to_smem %s31_s23, 16, %s1117_s0, [#allocation7]  }
  0x18   :  { %s39_s27 = sshll.u32 %s1118_s1, 4  ;;  %s1064_s30 = scalar_lea.hbm %s1294_s2, 576  ;;  %s40_s27 = int_to_ptr.vmem [resolvable:$true] %s39_s27 }
  0x19   :  { %p1065_p10 = scmp.ne.s32.totalorder %s1294_s2, %s1064_s30  ;;  %p1068_p11 = scmp.lt.u32.totalorder %s1064_s30, %s1294_s2 }
  0x1b   :  { %p1070_p12 = pnand %p1068_p11, %p1065_p10 }
  0x1d   :  { %1073 = shalt.err (!%p1070_p12)
}
  0x1e   :  { %s1074_s10 = scalar_lea.vmem %s40_s27, 576  ;;  %p1079_p0 = scmp.lt.s32.totalorder %s40_s27, %s40_s27 }
  0x1f   :  { %p1075_p13 = scmp.ne.s32.totalorder %s40_s27, %s1074_s10  ;;  %p1080_p1 = scmp.lt.s32.totalorder %s1074_s10, %s1074_s10 }
  0x21   :  { %p1081_p2 = por %p1080_p1, %p1079_p0 }
  0x23   :  { %p1082_p3 = pnand %p1081_p2, %p1075_p13 }
  0x25   :  { %1085 = shalt.err (!%p1082_p3)
}
  0x26   :  { %s1119_s11 = smov 32   ;;  %s1120_s12 = smov 2  }
  0x27   :  { %45 = dma.hbm_to_vmem [thread:$0]  %s1294_s2, 576, %s40_s27, [#allocation3], %s1119_s11, %s1119_s11, %s1120_s12  }
  0x28   :  { %1108 = dma.done.wait [#allocation5], 16  }
  0x29   :  { %1109 = vsyncadd [#allocation5], 4294967280 }
  0x2a   :  { %1110 = dma.done.wait [#allocation7], 16  }
  0x2b   :  { %1111 = vsyncadd [#allocation7], 4294967280 }
  0x2c   :  { %1112 = dma.done.wait [#allocation3], 576  }
  0x2d   :  { %1113 = vsyncadd [#allocation3], 4294966720 }
  0x2e   :  { %59 = sfence }
  0x2f   :  { %v66_v0 = vld [vmem:[#allocation8] sm:$0x3]  ;;  %v67_v1 = vld [vmem:[#allocation8 + $0x2] sm:$0x3]  ;;  %v1121_v2 = vmov 0.0   ;;  %vm1122_vm0 = vmmov 0  }
  0x30   :  { %919 = vmatprep.subr.bf16.mxu0 %v1121_v2  ;;  %v69_v3 = vunpack.c.l.u8.bf16 %v66_v0  ;;  %v70_v4 = vunpack.c.l.u8.bf16 %v67_v1  ;;  %v68_v5 = vld [vmem:[#allocation8 + $0x4] sm:$0x1]  ;;  %927 = vmatprep.subr.bf16.mxu1 %v1121_v2  ;;  %v213_v7 = vld [vmem:[#allocation8 + $0x6] sm:$0x3]  ;;  %vm90_vm1 = vcmask 1041408   ;;  %vm86_vm2 = vcmask 162816  }
  0x31   :  { %v71_v6 = vunpack.c.l.u8.bf16 %v68_v5  ;;  %923 = vmatprep.mubr.msk.bf16.mxu0 %vm1122_vm0, %v1121_v2  ;;  %v1181_v8 = vld [vmem:[%s1296_s4] sm:$0xff]   ;;  %931 = vmatprep.mubr.msk.bf16.mxu1 %vm1122_vm0, %v1121_v2  ;;  %v214_v10 = vld [vmem:[#allocation8 + $0x8] sm:$0x3]  ;;  %v215_v11 = vld [vmem:[#allocation8 + $0xa] sm:$0x1]  ;;  %v216_v13 = vunpack.c.l.u8.bf16 %v213_v7  ;;  %vm149_vm3 = vcmask 1043456  }
  0x32   :  { %v847_v9 = vcombine.low %v69_v3, %v70_v4  ;;  %928 = vmatpush3.bf16.msra.mxu1 %v1181_v8  ;;  %v217_v14 = vunpack.c.l.u8.bf16 %v214_v10  ;;  %v218_v16 = vunpack.c.l.u8.bf16 %v215_v11  ;;  %v1192_v17 = vld [vmem:[%s1295_s3] sm:$0xff]   ;;  %v336_v20 = vld [vmem:[#allocation8 + $0xc] sm:$0x3]  ;;  %v337_v21 = vld [vmem:[#allocation8 + $0xe] sm:$0x3]  ;;  %vm145_vm4 = vcmask 195584  }
  0x33   :  { %v848_v12 = vcombine.low %v71_v6, %v71_v6  ;;  %929 = vmatprep.subr.bf16.mxu1 %v1121_v2  ;;  %v338_v22 = vld [vmem:[#allocation8 + $0x10] sm:$0x1]  ;;  %v339_v23 = vunpack.c.l.u8.bf16 %v336_v20  ;;  %v340_v24 = vunpack.c.l.u8.bf16 %v337_v21  ;;  %v459_v29 = vld [vmem:[#allocation8 + $0x12] sm:$0x3]  ;;  %v460_v30 = vld [vmem:[#allocation8 + $0x14] sm:$0x3] }
  0x34   :  { %920 = vmatpush3.bf16.msra.mxu0 %v847_v9  ;;  %v853_v18 = vcombine.low %v216_v13, %v217_v14  ;;  %v854_v19 = vcombine.low %v218_v16, %v218_v16  ;;  %v341_v26 = vunpack.c.l.u8.bf16 %v338_v22  ;;  %v461_v31 = vld [vmem:[#allocation8 + $0x16] sm:$0x1]  ;;  %v462_v32 = vunpack.c.l.u8.bf16 %v459_v29  ;;  %v582_v38 = vld [vmem:[#allocation8 + $0x18] sm:$0x3]  ;;  %v583_v39 = vld [vmem:[#allocation8 + $0x1a] sm:$0x3] }
  0x35   :  { %921 = vmatprep.subr.bf16.mxu0 %v1121_v2  ;;  %v92_v15 = vsel %vm90_vm1, %v848_v12, 0  ;;  %v859_v27 = vcombine.low %v339_v23, %v340_v24  ;;  %v463_v33 = vunpack.c.l.u8.bf16 %v460_v30  ;;  %v464_v35 = vunpack.c.l.u8.bf16 %v461_v31  ;;  %v584_v40 = vld [vmem:[#allocation8 + $0x1c] sm:$0x1]  ;;  %v705_v47 = vld [vmem:[#allocation8 + $0x1e] sm:$0x3]  ;;  %s205_s19 = sld [smem:[#allocation6]] }
  0x36   :  { %v229_v25 = vsel %vm90_vm1, %v854_v19, 0  ;;  %v860_v28 = vcombine.low %v341_v26, %v341_v26  ;;  %v585_v41 = vunpack.c.l.u8.bf16 %v582_v38  ;;  %v586_v42 = vunpack.c.l.u8.bf16 %v583_v39  ;;  %v706_v48 = vld [vmem:[#allocation8 + $0x20] sm:$0x3]  ;;  %v707_v49 = vld [vmem:[#allocation8 + $0x22] sm:$0x1]  ;;  %s857_s20 = sld [smem:[#allocation2 + $0x1]] }
  0x37   :  { %v865_v36 = vcombine.low %v462_v32, %v463_v33  ;;  %v866_v37 = vcombine.low %v464_v35, %v464_v35  ;;  %v587_v44 = vunpack.c.l.u8.bf16 %v584_v40  ;;  %v708_v50 = vunpack.c.l.u8.bf16 %v705_v47  ;;  %v1039_v57 = vld [vmem:[%s1296_s4 + $0x8] ss:$0 sps:$4 sm:$0xff]   ;;  %s201_s4 = sld [smem:[#allocation2]]  ;;  %s1265_s21 = sld [smem:[#allocation6 + $0x1]] }
  0x38   :  { %922 = vmatpush3.bf16.msra.mxu0 %v92_v15  ;;  %v352_v34 = vsel %vm90_vm1, %v860_v28, 0  ;;  %v871_v45 = vcombine.low %v585_v41, %v586_v42  ;;  %v709_v51 = vunpack.c.l.u8.bf16 %v706_v48  ;;  %v710_v53 = vunpack.c.l.u8.bf16 %v707_v49  ;;  %s863_s22 = sld [smem:[#allocation2 + $0x2]]  ;;  %s869_s24 = sld [smem:[#allocation2 + $0x3]] }
  0x39   :  { %935 = vmatprep.subr.bf16.mxu0 %v1121_v2  ;;  %v475_v43 = vsel %vm90_vm1, %v866_v37, 0  ;;  %v872_v46 = vcombine.low %v587_v44, %v587_v44  ;;  %v151_v58 = vsel %vm149_vm3, %v1039_v57, 0  ;;  %vm209_vm5 = vcmask 130048   ;;  %s864_s23 = sld [smem:[#allocation6 + $0x2]]  ;;  %s870_s25 = sld [smem:[#allocation6 + $0x3]] }
  0x3a   :  { %v877_v54 = vcombine.low %v708_v50, %v709_v51  ;;  %v878_v55 = vcombine.low %v710_v53, %v710_v53  ;;  %930 = vmatpush3.bf16.msra.mxu1 %v151_v58  ;;  %s875_s26 = sld [smem:[#allocation2 + $0x4]]  ;;  %s881_s1 = sld [smem:[#allocation2 + $0x5]] }
  0x3b   :  { %924 = vmatmul.mubr.msk.bf16.vlgmr.msra.gmra.mrb[0].mxu0 %vm86_vm2, %v1192_v17  ;;  %v598_v52 = vsel %vm90_vm1, %v872_v46, 0  ;;  %943 = vmatprep.subr.bf16.mxu1 %v1121_v2  ;;  %v206_v35 = vstv %s205_s19  ;;  %s876_s0 = sld [smem:[#allocation6 + $0x4]]  ;;  %s882_s27 = sld [smem:[#allocation6 + $0x5]] }
  0x3c   :  { %936 = vmatpush3.bf16.msra.mxu0 %v853_v18  ;;  %939 = vmatprep.mubr.msk.bf16.mxu0 %vm1122_vm0, %v1121_v2  ;;  %v721_v56 = vsel %vm90_vm1, %v878_v55, 0  ;;  %v325_v48 = vstv %s857_s20  ;;  %s1123_s28 = smov [#allocation9]  }
  0x3d   :  { %937 = vmatprep.subr.bf16.mxu0 %v1121_v2  ;;  %v202_v33 = vstv %s201_s4  ;;  %v329_v51 = vstv %s1265_s21  ;;  %s832_s29 = sshll.u32 %s1123_s28, 4  ;;  %s833_s29 = int_to_ptr.vmem [resolvable:$true] %s832_s29 }
  0x3e   :  { %s1086_s30 = scalar_lea.vmem %s833_s29, 1536  ;;  %p1091_p5 = scmp.lt.s32.totalorder %s833_s29, %s833_s29 }
  0x3f   :  { %p1087_p4 = scmp.ne.s32.totalorder %s833_s29, %s1086_s30  ;;  %p1092_p6 = scmp.lt.s32.totalorder %s1086_s30, %s1086_s30 }
  0x40   :  { %938 = vmatpush3.bf16.msra.mxu0 %v229_v25 }
  0x41   :  { %951 = vmatprep.subr.bf16.mxu0 %v1121_v2  ;;  %p1093_p7 = por %p1092_p6, %p1091_p5 }
  0x43   :  { %940 = vmatmul.mubr.msk.bf16.vlgmr.msra.gmra.mrb[4].mxu0 %vm86_vm2, %v1192_v17  ;;  %p1094_p8 = pnand %p1093_p7, %p1087_p4 }
  0x44   :  { %952 = vmatpush3.bf16.msra.mxu0 %v859_v27  ;;  %955 = vmatprep.mubr.msk.bf16.mxu0 %vm1122_vm0, %v1121_v2 }
  0x45   :  { %953 = vmatprep.subr.bf16.mxu0 %v1121_v2 }
  0x48   :  { %954 = vmatpush3.bf16.msra.mxu0 %v352_v34 }
  0x49   :  { %967 = vmatprep.subr.bf16.mxu0 %v1121_v2 }
  0x4b   :  { %956 = vmatmul.mubr.msk.bf16.vlgmr.msra.gmra.mrb[8].mxu0 %vm86_vm2, %v1192_v17 }
  0x4c   :  { %968 = vmatpush3.bf16.msra.mxu0 %v865_v36  ;;  %971 = vmatprep.mubr.msk.bf16.mxu0 %vm1122_vm0, %v1121_v2 }
  0x4d   :  { %969 = vmatprep.subr.bf16.mxu0 %v1121_v2 }
  0x50   :  { %970 = vmatpush3.bf16.msra.mxu0 %v475_v43 }
  0x51   :  { %983 = vmatprep.subr.bf16.mxu0 %v1121_v2 }
  0x53   :  { %972 = vmatmul.mubr.msk.bf16.vlgmr.msra.gmra.mrb[12].mxu0 %vm86_vm2, %v1192_v17 }
  0x54   :  { %984 = vmatpush3.bf16.msra.mxu0 %v871_v45  ;;  %987 = vmatprep.mubr.msk.bf16.mxu0 %vm1122_vm0, %v1121_v2 }
  0x55   :  { %985 = vmatprep.subr.bf16.mxu0 %v1121_v2 }
  0x58   :  { %986 = vmatpush3.bf16.msra.mxu0 %v598_v52 }
  0x59   :  { %999 = vmatprep.subr.bf16.mxu0 %v1121_v2 }
  0x5b   :  { %988 = vmatmul.mubr.msk.bf16.vlgmr.msra.gmra.mrb[16].mxu0 %vm86_vm2, %v1192_v17 }
  0x5c   :  { %1000 = vmatpush3.bf16.msra.mxu0 %v877_v54  ;;  %1003 = vmatprep.mubr.msk.bf16.mxu0 %vm1122_vm0, %v1121_v2 }
  0x5d   :  { %1001 = vmatprep.subr.bf16.mxu0 %v1121_v2 }
  0x60   :  { %1002 = vmatpush3.bf16.msra.mxu0 %v721_v56 }
  0x63   :  { %1004 = vmatmul.mubr.msk.bf16.vlgmr.msra.gmra.mrb[20].mxu0 %vm86_vm2, %v1192_v17 }
 0x10e   :  { %v128_v59 = vpop.f32.mrb[0].mxu0 }
 0x10f   :  { %v925_v60 = vpop.f32.mrb[1].mxu0 }
 0x110   :  { %v131_v61 = vpop.f32.mrb[2].mxu0 }
 0x111   :  { %v135_v62 = vpack.c.bf16 %v131_v61, %v128_v59  ;;  %v926_v63 = vpop.f32.mrb[3].mxu0 }
 0x113   :  { %932 = vmatmul.mubr.msk.bf16.vlgmr.msra.gmra.mrb[0].mxu1 %vm145_vm4, %v135_v62 }
 0x114   :  { %944 = vmatpush3.bf16.msra.mxu1 %v1181_v8  ;;  %947 = vmatprep.mubr.msk.bf16.mxu1 %vm1122_vm0, %v1121_v2 }
 0x115   :  { %945 = vmatprep.subr.bf16.mxu1 %v1121_v2 }
 0x116   :  { %v265_v0 = vpop.f32.mrb[4].mxu0 }
 0x117   :  { %v941_v1 = vpop.f32.mrb[5].mxu0 }
 0x118   :  { %v268_v3 = vpop.f32.mrb[6].mxu0  ;;  %946 = vmatpush3.bf16.msra.mxu1 %v151_v58 }
 0x119   :  { %v272_v4 = vpack.c.bf16 %v268_v3, %v265_v0  ;;  %v942_v5 = vpop.f32.mrb[7].mxu0  ;;  %959 = vmatprep.subr.bf16.mxu1 %v1121_v2  ;;  %v448_v0 = vstv %s863_s22 }
 0x11b   :  { %948 = vmatmul.mubr.msk.bf16.vlgmr.msra.gmra.mrb[4].mxu1 %vm145_vm4, %v272_v4  ;;  %v452_v4 = vstv %s864_s23 }
 0x11c   :  { %960 = vmatpush3.bf16.msra.mxu1 %v1181_v8  ;;  %963 = vmatprep.mubr.msk.bf16.mxu1 %vm1122_vm0, %v1121_v2 }
 0x11d   :  { %961 = vmatprep.subr.bf16.mxu1 %v1121_v2 }
 0x11e   :  { %v388_v6 = vpop.f32.mrb[8].mxu0 }
 0x11f   :  { %v957_v7 = vpop.f32.mrb[9].mxu0 }
 0x120   :  { %v391_v9 = vpop.f32.mrb[10].mxu0  ;;  %962 = vmatpush3.bf16.msra.mxu1 %v151_v58 }
 0x121   :  { %v395_v10 = vpack.c.bf16 %v391_v9, %v388_v6  ;;  %v958_v11 = vpop.f32.mrb[11].mxu0  ;;  %975 = vmatprep.subr.bf16.mxu1 %v1121_v2 }
 0x123   :  { %964 = vmatmul.mubr.msk.bf16.vlgmr.msra.gmra.mrb[8].mxu1 %vm145_vm4, %v395_v10 }
 0x124   :  { %976 = vmatpush3.bf16.msra.mxu1 %v1181_v8  ;;  %979 = vmatprep.mubr.msk.bf16.mxu1 %vm1122_vm0, %v1121_v2 }
 0x125   :  { %977 = vmatprep.subr.bf16.mxu1 %v1121_v2 }
 0x126   :  { %v511_v12 = vpop.f32.mrb[12].mxu0 }
 0x127   :  { %v973_v13 = vpop.f32.mrb[13].mxu0 }
 0x128   :  { %v514_v14 = vpop.f32.mrb[14].mxu0  ;;  %978 = vmatpush3.bf16.msra.mxu1 %v151_v58 }
 0x129   :  { %v518_v15 = vpack.c.bf16 %v514_v14, %v511_v12  ;;  %v974_v16 = vpop.f32.mrb[15].mxu0  ;;  %991 = vmatprep.subr.bf16.mxu1 %v1121_v2 }
 0x12b   :  { %980 = vmatmul.mubr.msk.bf16.vlgmr.msra.gmra.mrb[12].mxu1 %vm145_vm4, %v518_v15 }
 0x12c   :  { %992 = vmatpush3.bf16.msra.mxu1 %v1181_v8  ;;  %995 = vmatprep.mubr.msk.bf16.mxu1 %vm1122_vm0, %v1121_v2 }
 0x12d   :  { %993 = vmatprep.subr.bf16.mxu1 %v1121_v2 }
 0x12e   :  { %v634_v17 = vpop.f32.mrb[16].mxu0 }
 0x12f   :  { %v989_v18 = vpop.f32.mrb[17].mxu0 }
 0x130   :  { %v637_v19 = vpop.f32.mrb[18].mxu0  ;;  %994 = vmatpush3.bf16.msra.mxu1 %v151_v58  ;;  %v571_v18 = vstv %s869_s24 }
 0x131   :  { %v641_v20 = vpack.c.bf16 %v637_v19, %v634_v17  ;;  %v990_v21 = vpop.f32.mrb[19].mxu0  ;;  %1007 = vmatprep.subr.bf16.mxu1 %v1121_v2 }
 0x132   :  { %v575_v21 = vstv %s870_s25 }
 0x133   :  { %996 = vmatmul.mubr.msk.bf16.vlgmr.msra.gmra.mrb[16].mxu1 %vm145_vm4, %v641_v20 }
 0x134   :  { %1008 = vmatpush3.bf16.msra.mxu1 %v1181_v8  ;;  %1011 = vmatprep.mubr.msk.bf16.mxu1 %vm1122_vm0, %v1121_v2 }
 0x135   :  { %1009 = vmatprep.subr.bf16.mxu1 %v1121_v2 }
 0x136   :  { %v757_v22 = vpop.f32.mrb[20].mxu0 }
 0x137   :  { %v1005_v23 = vpop.f32.mrb[21].mxu0 }
 0x138   :  { %v760_v24 = vpop.f32.mrb[22].mxu0  ;;  %1010 = vmatpush3.bf16.msra.mxu1 %v151_v58 }
 0x139   :  { %v764_v25 = vpack.c.bf16 %v760_v24, %v757_v22  ;;  %v1006_v26 = vpop.f32.mrb[23].mxu0 }
 0x13b   :  { %1012 = vmatmul.mubr.msk.bf16.vlgmr.msra.gmra.mrb[20].mxu1 %vm145_vm4, %v764_v25 }
 0x1e6   :  { %v187_v27 = vpop.f32.mrb[0].mxu1 }
 0x1e7   :  { %v1015_v28 = vround.rtne.f32 %v187_v27  ;;  %v933_v29 = vpop.f32.mrb[1].mxu1 }
 0x1e8   :  { %v190_v30 = vpop.f32.mrb[2].mxu1 }
 0x1e9   :  { %v196_v8 = vmax.f32 %v1015_v28, 0.0  ;;  %v1016_v31 = vround.rtne.f32 %v190_v30  ;;  %v934_v32 = vpop.f32.mrb[3].mxu1 }
 0x1eb   :  { %v198_v2 = vmin.f32 %v196_v8, 255.0  ;;  %v197_v34 = vmax.f32 %v1016_v31, 0.0 }
 0x1ed   :  { %v203_v36 = vmul.f32 %v202_v33, %v198_v2  ;;  %v199_v37 = vmin.f32 %v197_v34, 255.0 }
 0x1ee   :  { %v310_v38 = vpop.f32.mrb[4].mxu1 }
 0x1ef   :  { %v207_v39 = vadd.f32 %v206_v35, %v203_v36  ;;  %v204_v40 = vmul.f32 %v202_v33, %v199_v37  ;;  %v1017_v41 = vround.rtne.f32 %v310_v38  ;;  %v949_v42 = vpop.f32.mrb[5].mxu1  ;;  %v694_v33 = vstv %s875_s26 }
 0x1f0   :  { %v313_v43 = vpop.f32.mrb[6].mxu1 }
 0x1f1   :  { %210 = vst.msk [vmem:[#allocation9] sm:$0xff] %vm209_vm5, %v207_v39  ;;  %v208_v44 = vadd.f32 %v206_v35, %v204_v40  ;;  %v319_v45 = vmax.f32 %v1017_v41, 0.0  ;;  %v1018_v46 = vround.rtne.f32 %v313_v43  ;;  %v950_v47 = vpop.f32.mrb[7].mxu1  ;;  %v698_v35 = vstv %s876_s0 }
 0x1f3   :  { %211 = vst.msk [vmem:[#allocation9 + $0x8] sm:$0xff] %vm209_vm5, %v208_v44  ;;  %v321_v49 = vmin.f32 %v319_v45, 255.0  ;;  %v320_v50 = vmax.f32 %v1018_v46, 0.0 }
 0x1f5   :  { %v326_v52 = vmul.f32 %v325_v48, %v321_v49  ;;  %v322_v53 = vmin.f32 %v320_v50, 255.0 }
 0x1f6   :  { %v433_v54 = vpop.f32.mrb[8].mxu1 }
 0x1f7   :  { %v330_v55 = vadd.f32 %v329_v51, %v326_v52  ;;  %v327_v56 = vmul.f32 %v325_v48, %v322_v53  ;;  %v1019_v57 = vround.rtne.f32 %v433_v54  ;;  %v965_v58 = vpop.f32.mrb[9].mxu1  ;;  %v817_v48 = vstv %s881_s1 }
 0x1f8   :  { %v436_v59 = vpop.f32.mrb[10].mxu1 }
 0x1f9   :  { %333 = vst.msk [vmem:[#allocation9 + $0x10] sm:$0xff] %vm209_vm5, %v330_v55  ;;  %v331_v60 = vadd.f32 %v329_v51, %v327_v56  ;;  %v442_v61 = vmax.f32 %v1019_v57, 0.0  ;;  %v1020_v62 = vround.rtne.f32 %v436_v59  ;;  %v966_v63 = vpop.f32.mrb[11].mxu1  ;;  %v821_v51 = vstv %s882_s27 }
 0x1fb   :  { %334 = vst.msk [vmem:[#allocation9 + $0x18] sm:$0xff] %vm209_vm5, %v331_v60  ;;  %v444_v1 = vmin.f32 %v442_v61, 255.0  ;;  %v443_v3 = vmax.f32 %v1020_v62, 0.0 }
 0x1fd   :  { %v449_v5 = vmul.f32 %v448_v0, %v444_v1  ;;  %v445_v6 = vmin.f32 %v443_v3, 255.0 }
 0x1fe   :  { %v556_v7 = vpop.f32.mrb[12].mxu1 }
 0x1ff   :  { %v453_v9 = vadd.f32 %v452_v4, %v449_v5  ;;  %v450_v10 = vmul.f32 %v448_v0, %v445_v6  ;;  %v1021_v11 = vround.rtne.f32 %v556_v7  ;;  %v981_v12 = vpop.f32.mrb[13].mxu1 }
 0x200   :  { %v559_v13 = vpop.f32.mrb[14].mxu1 }
 0x201   :  { %456 = vst.msk [vmem:[#allocation9 + $0x20] sm:$0xff] %vm209_vm5, %v453_v9  ;;  %v454_v14 = vadd.f32 %v452_v4, %v450_v10  ;;  %v565_v15 = vmax.f32 %v1021_v11, 0.0  ;;  %v1022_v16 = vround.rtne.f32 %v559_v13  ;;  %v982_v17 = vpop.f32.mrb[15].mxu1 }
 0x203   :  { %457 = vst.msk [vmem:[#allocation9 + $0x28] sm:$0xff] %vm209_vm5, %v454_v14  ;;  %v567_v19 = vmin.f32 %v565_v15, 255.0  ;;  %v566_v20 = vmax.f32 %v1022_v16, 0.0 }
 0x205   :  { %v572_v22 = vmul.f32 %v571_v18, %v567_v19  ;;  %v568_v23 = vmin.f32 %v566_v20, 255.0 }
 0x206   :  { %v679_v24 = vpop.f32.mrb[16].mxu1 }
 0x207   :  { %v576_v25 = vadd.f32 %v575_v21, %v572_v22  ;;  %v573_v26 = vmul.f32 %v571_v18, %v568_v23  ;;  %v1023_v27 = vround.rtne.f32 %v679_v24  ;;  %v997_v28 = vpop.f32.mrb[17].mxu1 }
 0x208   :  { %v682_v29 = vpop.f32.mrb[18].mxu1 }
 0x209   :  { %579 = vst.msk [vmem:[#allocation9 + $0x30] sm:$0xff] %vm209_vm5, %v576_v25  ;;  %v577_v30 = vadd.f32 %v575_v21, %v573_v26  ;;  %v688_v8 = vmax.f32 %v1023_v27, 0.0  ;;  %v1024_v31 = vround.rtne.f32 %v682_v29  ;;  %v998_v32 = vpop.f32.mrb[19].mxu1 }
 0x20b   :  { %580 = vst.msk [vmem:[#allocation9 + $0x38] sm:$0xff] %vm209_vm5, %v577_v30  ;;  %v690_v2 = vmin.f32 %v688_v8, 255.0  ;;  %v689_v34 = vmax.f32 %v1024_v31, 0.0 }
 0x20d   :  { %v695_v36 = vmul.f32 %v694_v33, %v690_v2  ;;  %v691_v37 = vmin.f32 %v689_v34, 255.0 }
 0x20e   :  { %v802_v38 = vpop.f32.mrb[20].mxu1 }
 0x20f   :  { %v699_v39 = vadd.f32 %v698_v35, %v695_v36  ;;  %v696_v40 = vmul.f32 %v694_v33, %v691_v37  ;;  %v1025_v41 = vround.rtne.f32 %v802_v38  ;;  %v1013_v42 = vpop.f32.mrb[21].mxu1 }
 0x210   :  { %v805_v43 = vpop.f32.mrb[22].mxu1 }
 0x211   :  { %702 = vst.msk [vmem:[#allocation9 + $0x40] sm:$0xff] %vm209_vm5, %v699_v39  ;;  %v700_v44 = vadd.f32 %v698_v35, %v696_v40  ;;  %v811_v45 = vmax.f32 %v1025_v41, 0.0  ;;  %v1026_v46 = vround.rtne.f32 %v805_v43  ;;  %v1014_v47 = vpop.f32.mrb[23].mxu1 }
 0x213   :  { %703 = vst.msk [vmem:[#allocation9 + $0x48] sm:$0xff] %vm209_vm5, %v700_v44  ;;  %v813_v49 = vmin.f32 %v811_v45, 255.0  ;;  %v812_v50 = vmax.f32 %v1026_v46, 0.0 }
 0x215   :  { %v818_v52 = vmul.f32 %v817_v48, %v813_v49  ;;  %v814_v53 = vmin.f32 %v812_v50, 255.0 }
 0x217   :  { %v822_v54 = vadd.f32 %v821_v51, %v818_v52  ;;  %v819_v55 = vmul.f32 %v817_v48, %v814_v53 }
 0x219   :  { %825 = vst.msk [vmem:[#allocation9 + $0x50] sm:$0xff] %vm209_vm5, %v822_v54  ;;  %v823_v56 = vadd.f32 %v821_v51, %v819_v55 }
 0x21b   :  { %826 = vst.msk [vmem:[#allocation9 + $0x58] sm:$0xff] %vm209_vm5, %v823_v56 }
 0x21c   :  { %1097 = shalt.err (!%p1094_p8)
}
 0x21d   :  { %s1098_s8 = scalar_lea.hbm %s1297_s5, 1536 }
 0x21e   :  { %p1099_p9 = scmp.ne.s32.totalorder %s1297_s5, %s1098_s8  ;;  %p1102_p10 = scmp.lt.u32.totalorder %s1098_s8, %s1297_s5 }
 0x220   :  { %p1104_p11 = pnand %p1102_p10, %p1099_p9 }
 0x222   :  { %1107 = shalt.err (!%p1104_p11)
}
 0x223   :  { %s1124_s13 = smov 128   ;;  %s1125_s14 = smov 8  }
 0x224   :  { %838 = dma.vmem_to_hbm [thread:$0]  %s833_s29, 1536, %s1297_s5, [#allocation4], %s1124_s13, %s1124_s13, %s1125_s14  }
 0x225   :  { %1114 = dma.done.wait [#allocation4], 1536  }
 0x226   :  { %1115 = vsyncadd [#allocation4], 4294965760 }
 0x227   :  { %842 = vsyncpa [#allocation3], 1 }
 0x228   :  { %843 = vsyncpa [#allocation4], 1 }
 0x229   :  { %844 = vsyncpa [#allocation5], 1 }
 0x22a   :  { %845 = vsyncpa [#allocation7], 1 }

</bundles_post_ra>
